<compile_context>
chip_gen: v5e
topology: v5e:2x2
jax: 0.10.0
libtpu: 0.0.40
codegen_flags: <defaults>
</compile_context>

<pallas_src>
import functools

import jax
import jax.numpy as jnp
from jax.experimental import pallas as pl
from jax.experimental.pallas import tpu as pltpu


def _pad8(n):
    return (n + 7) // 8 * 8


def _param_layout(label_dim, hidden, hidden2, action_dim):
    """Row offsets of each parameter block inside the packed slab."""
    blocks = (
        ("w1lp", label_dim + 7),  # labels|poses encoder weights  (L+7, H)
        ("w1f", 1),               # grasp-flag encoder row        (1, H)
        ("b1", 1),                # encoder bias                  (1, H)
        ("w2p", hidden),          # pooled-state Q weights        (H, H2)
        ("w2e", 7),               # ee-pose Q weights             (7, H2)
        ("w2a", action_dim),      # action Q weights              (A, H2)
        ("b2", 1),                # Q hidden bias                 (1, H2)
        ("w3", 1),                # Q output weights              (1, H2)
        ("b3", 1),                # Q output bias (scalar at col 0)
    )
    rows, off = {}, 0
    for name, r in blocks:
        rows[name] = off
        off += _pad8(r)
    width = max(hidden, hidden2)
    return rows, off, width


# -----------------------------------------------------------------------------
# Fused kernel:  encode objects -> mean-pool per batch -> per-action Q values.
# Single grid step; everything stays resident in VMEM.
# -----------------------------------------------------------------------------
def _make_fused_kernel(B, O, L, H, H2, A, rows):
    inv_O = 1.0 / O
    Flp = L + 7  # labels|poses feature width

    def kernel(flags_ref, lp_ref, ee_ref, act_ref, p_ref, q_ref):
        # ---- static, tile-aligned views into the packed parameter slab ------
        w1lp = p_ref[rows["w1lp"]:rows["w1lp"] + Flp, 0:H]   # (L+7, H)
        w1f = p_ref[rows["w1f"]:rows["w1f"] + 1, 0:H]        # (1, H)
        b1 = p_ref[rows["b1"]:rows["b1"] + 1, 0:H]           # (1, H)
        w2p = p_ref[rows["w2p"]:rows["w2p"] + H, 0:H2]       # (H, H2)
        w2e = p_ref[rows["w2e"]:rows["w2e"] + 7, 0:H2]       # (7, H2)
        w2a = p_ref[rows["w2a"]:rows["w2a"] + A, 0:H2]       # (A, H2)
        b2 = p_ref[rows["b2"]:rows["b2"] + 1, 0:H2]          # (1, H2)
        w3 = p_ref[rows["w3"]:rows["w3"] + 1, 0:H2]          # (1, H2)
        b3 = p_ref[rows["b3"]:rows["b3"] + 1, 0:1]           # (1, 1)

        # ---- per-object encoder: single merged labels|poses matmul ----------
        h = (flags_ref[...] * w1f                             # (BO,1)*(1,H)
             + jnp.dot(lp_ref[...], w1lp,
                       preferred_element_type=jnp.float32)
             + b1)
        h = jnp.maximum(h, 0.0)                               # (BO, H)

        # ---- mean-pool over objects: layout-free sublane reduction ----------
        pooled = h.reshape(B, O, H).sum(axis=1) * inv_O       # (B, H)

        # ---- Q head: split state concat; broadcast state over actions -------
        s_part = (jnp.dot(pooled, w2p, preferred_element_type=jnp.float32)
                  + jnp.dot(ee_ref[...], w2e,
                            preferred_element_type=jnp.float32))   # (B, H2)
        a_part = jnp.dot(act_ref[...], w2a,
                         preferred_element_type=jnp.float32)        # (A, H2)
        h2 = jnp.maximum(
            s_part[:, None, :] + a_part[None, :, :] + b2[None], 0.0)  # (B,A,H2)

        # Lane-reduction Q output; b3 folded into the slab ((1,1) broadcast).
        q_ref[...] = jnp.sum(h2 * w3[None], axis=-1) + b3     # (B, A)

    return kernel


def init_params(key, label_dim, hidden, hidden2, action_dim):
    """Deterministic synthetic parameters, pre-packed into one VMEM slab."""
    ks = jax.random.split(key, 5)
    scale = 0.1
    fin = 1 + label_dim + 7
    w1 = scale * jax.random.normal(ks[0], (fin, hidden), jnp.float32)
    w2s = scale * jax.random.normal(ks[1], (hidden + 7, hidden2), jnp.float32)
    w2a = scale * jax.random.normal(ks[2], (action_dim, hidden2), jnp.float32)
    w3 = scale * jax.random.normal(ks[3], (hidden2, 1), jnp.float32).T  # (1, H2)

    blocks = {
        "w1lp": w1[1:, :],                                  # labels|poses rows
        "w1f": w1[0:1, :],                                  # grasp-flag row
        "b1": jnp.zeros((1, hidden), jnp.float32),
        "w2p": w2s[:hidden, :],
        "w2e": w2s[hidden:, :],
        "w2a": w2a,
        "b2": jnp.zeros((1, hidden2), jnp.float32),
        "w3": w3,
        "b3": jnp.zeros((1, 1), jnp.float32),
    }
    rows, total_rows, width = _param_layout(label_dim, hidden, hidden2, action_dim)
    slab = jnp.zeros((total_rows, width), jnp.float32)
    for name, blk in blocks.items():
        r = rows[name]
        slab = slab.at[r:r + blk.shape[0], 0:blk.shape[1]].set(blk)
    return {"slab": slab}


def dqn_model_forward(params, observation, actions, hidden=32, hidden2=64):
    """Mirrors DqnModel.forward for model == 'closedloop_pose_net'."""
    grasp_flags = observation["grasp_flags"]        # [B, O]
    object_labels = observation["object_labels"]    # [B, O, L]
    object_poses = observation["object_poses"]      # [B, O, 7]
    ee_pose = observation["ee_poses"][:, -1]        # [B, 7]  (== ee_poses[:, -1:] squeezed)

    B, O = grasp_flags.shape
    L = object_labels.shape[-1]
    A, Da = actions.shape
    H, H2 = hidden, hidden2
    BO = B * O

    # Layout-only glue: flatten (batch, object) axes; single labels|poses concat.
    flags = grasp_flags.reshape(BO, 1).astype(jnp.float32)
    labels_poses = jnp.concatenate(
        [object_labels.reshape(BO, L).astype(jnp.float32),
         object_poses.reshape(BO, 7).astype(jnp.float32)], axis=-1)  # (BO, L+7)
    ee = ee_pose.astype(jnp.float32)
    acts = actions.astype(jnp.float32)

    rows, total_rows, width = _param_layout(L, H, H2, A)
    slab = params["slab"]
    assert slab.shape == (total_rows, width)

    vmem = pl.BlockSpec(memory_space=pltpu.MemorySpace.VMEM)
    inputs = (flags, labels_poses, ee, acts, slab)

    flops = (BO * H                       # grasp-flag broadcast multiply
             + 2 * BO * (L + 7) * H       # merged encoder matmul
             + 2 * BO * H                 # bias + relu
             + BO * H                     # object mean-pool reduction
             + 2 * B * (H + 7) * H2       # state branch of Q head
             + 2 * A * Da * H2            # action branch of Q head
             + 4 * B * A * H2)            # broadcast add + relu + mul + reduce
    bytes_accessed = sum(int(x.size) * 4 for x in inputs) + B * A * 4

    q = pl.pallas_call(
        _make_fused_kernel(B, O, L, H, H2, A, rows),
        out_shape=jax.ShapeDtypeStruct((B, A), jnp.float32),
        in_specs=[vmem] * len(inputs),
        out_specs=vmem,
        cost_estimate=pl.CostEstimate(flops=flops, transcendentals=0,
                                      bytes_accessed=bytes_accessed),
    )(*inputs)
    return q                                # [B, A]


if __name__ == "__main__":
    # Small shapes consistent with the module's forward signature.
    B = 2            # batch
    O = 8            # objects in the scene
    L = 7            # object-label one-hot size
    T = 8            # episode_length (ee_poses history)
    A = 6            # number of discrete actions (env.actions)
    Da = 6           # action feature dim (delta pose)
    H, H2 = 32, 64   # hidden sizes

    root = jax.random.PRNGKey(0)
    k_obs, k_act, k_par = jax.random.split(root, 3)
    ko = jax.random.split(k_obs, 4)

    observation = {
        "grasp_flags": (jax.random.uniform(ko[0], (B, O)) > 0.5).astype(jnp.float32),
        "object_labels": jax.nn.one_hot(
            jax.random.randint(ko[1], (B, O), 0, L), L, dtype=jnp.float32),
        "object_poses": jax.random.normal(ko[2], (B, O, 7), jnp.float32),
        "ee_poses": jax.random.normal(ko[3], (B, T, 7), jnp.float32),
    }
    actions = jax.random.normal(k_act, (A, Da), jnp.float32)   # env.actions

    params = init_params(k_par, L, H, H2, Da)

    fwd = jax.jit(functools.partial(dqn_model_forward, hidden=H, hidden2=H2))
    q_values = fwd(params, observation, actions)
    q_values = jax.block_until_ready(q_values)
    assert q_values.shape == (B, A) and q_values.dtype == jnp.float32
    print("KERNEL_OK")
</pallas_src>

<mosaic_0001>
module attributes {stable_mosaic.version = 11 : i64} {
  func.func @kernel(%arg0: memref<16x1xf32, #tpu.memory_space<vmem>>, %arg1: memref<16x14xf32, #tpu.memory_space<vmem>>, %arg2: memref<2x7xf32, #tpu.memory_space<vmem>>, %arg3: memref<6x6xf32, #tpu.memory_space<vmem>>, %arg4: memref<104x64xf32, #tpu.memory_space<vmem>>, %arg5: memref<2x6xf32, #tpu.memory_space<vmem>>) attributes {dimension_semantics = [], scalar_prefetch = 0 : i64, scratch_operands = 0 : i64, tpu.core_type = #tpu.core_type<tc>} {
    %c0 = arith.constant 0 : index
    %c0_0 = arith.constant 0 : index
    %0 = vector.load %arg4[%c0, %c0_0] : memref<104x64xf32, #tpu.memory_space<vmem>>, vector<14x32xf32>
    %c16 = arith.constant 16 : index
    %c0_1 = arith.constant 0 : index
    %1 = vector.load %arg4[%c16, %c0_1] : memref<104x64xf32, #tpu.memory_space<vmem>>, vector<1x32xf32>
    %c24 = arith.constant 24 : index
    %c0_2 = arith.constant 0 : index
    %2 = vector.load %arg4[%c24, %c0_2] : memref<104x64xf32, #tpu.memory_space<vmem>>, vector<1x32xf32>
    %c32 = arith.constant 32 : index
    %c0_3 = arith.constant 0 : index
    %3 = vector.load %arg4[%c32, %c0_3] : memref<104x64xf32, #tpu.memory_space<vmem>>, vector<32x64xf32>
    %c64 = arith.constant 64 : index
    %c0_4 = arith.constant 0 : index
    %4 = vector.load %arg4[%c64, %c0_4] : memref<104x64xf32, #tpu.memory_space<vmem>>, vector<7x64xf32>
    %c72 = arith.constant 72 : index
    %c0_5 = arith.constant 0 : index
    %5 = vector.load %arg4[%c72, %c0_5] : memref<104x64xf32, #tpu.memory_space<vmem>>, vector<6x64xf32>
    %c80 = arith.constant 80 : index
    %c0_6 = arith.constant 0 : index
    %6 = vector.load %arg4[%c80, %c0_6] : memref<104x64xf32, #tpu.memory_space<vmem>>, vector<1x64xf32>
    %c88 = arith.constant 88 : index
    %c0_7 = arith.constant 0 : index
    %7 = vector.load %arg4[%c88, %c0_7] : memref<104x64xf32, #tpu.memory_space<vmem>>, vector<1x64xf32>
    %c96 = arith.constant 96 : index
    %c0_8 = arith.constant 0 : index
    %8 = vector.load %arg4[%c96, %c0_8] : memref<104x64xf32, #tpu.memory_space<vmem>>, vector<1x1xf32>
    %c0_9 = arith.constant 0 : index
    %c0_10 = arith.constant 0 : index
    %9 = vector.load %arg0[%c0_9, %c0_10] : memref<16x1xf32, #tpu.memory_space<vmem>>, vector<16x1xf32>
    %10 = vector.broadcast %9 : vector<16x1xf32> to vector<16x32xf32>
    %11 = vector.broadcast %1 : vector<1x32xf32> to vector<16x32xf32>
    %12 = arith.mulf %10, %11 : vector<16x32xf32>
    %c0_11 = arith.constant 0 : index
    %c0_12 = arith.constant 0 : index
    %13 = vector.load %arg1[%c0_11, %c0_12] : memref<16x14xf32, #tpu.memory_space<vmem>>, vector<16x14xf32>
    %cst = arith.constant dense<0.000000e+00> : vector<16x32xf32>
    %14 = tpu.matmul %13, %0, %cst {dimension_numbers = #tpu.dot_dimension_numbers<[1], [0], [0], [1], [0, 0, 1, 1], [], []>} : vector<16x14xf32>, vector<14x32xf32>, vector<16x32xf32> -> vector<16x32xf32>
    %15 = arith.addf %12, %14 : vector<16x32xf32>
    %16 = vector.broadcast %2 : vector<1x32xf32> to vector<16x32xf32>
    %17 = arith.addf %15, %16 : vector<16x32xf32>
    %cst_13 = arith.constant 0.000000e+00 : f32
    %18 = vector.broadcast %cst_13 : f32 to vector<16x32xf32>
    %19 = arith.maximumf %17, %18 : vector<16x32xf32>
    %20 = vector.shape_cast %19 : vector<16x32xf32> to vector<2x8x32xf32>
    %cst_14 = arith.constant dense<0.000000e+00> : vector<2x32xf32>
    %21 = vector.multi_reduction <add>, %20, %cst_14 [1] : vector<2x8x32xf32> to vector<2x32xf32>
    %cst_15 = arith.constant 1.250000e-01 : f32
    %22 = vector.broadcast %cst_15 : f32 to vector<2x32xf32>
    %23 = arith.mulf %21, %22 : vector<2x32xf32>
    %cst_16 = arith.constant dense<0.000000e+00> : vector<2x64xf32>
    %24 = tpu.matmul %23, %3, %cst_16 {dimension_numbers = #tpu.dot_dimension_numbers<[1], [0], [0], [1], [0, 0, 1, 1], [], []>} : vector<2x32xf32>, vector<32x64xf32>, vector<2x64xf32> -> vector<2x64xf32>
    %c0_17 = arith.constant 0 : index
    %c0_18 = arith.constant 0 : index
    %25 = vector.load %arg2[%c0_17, %c0_18] : memref<2x7xf32, #tpu.memory_space<vmem>>, vector<2x7xf32>
    %cst_19 = arith.constant dense<0.000000e+00> : vector<2x64xf32>
    %26 = tpu.matmul %25, %4, %cst_19 {dimension_numbers = #tpu.dot_dimension_numbers<[1], [0], [0], [1], [0, 0, 1, 1], [], []>} : vector<2x7xf32>, vector<7x64xf32>, vector<2x64xf32> -> vector<2x64xf32>
    %27 = arith.addf %24, %26 : vector<2x64xf32>
    %c0_20 = arith.constant 0 : index
    %c0_21 = arith.constant 0 : index
    %28 = vector.load %arg3[%c0_20, %c0_21] : memref<6x6xf32, #tpu.memory_space<vmem>>, vector<6x6xf32>
    %cst_22 = arith.constant dense<0.000000e+00> : vector<6x64xf32>
    %29 = tpu.matmul %28, %5, %cst_22 {dimension_numbers = #tpu.dot_dimension_numbers<[1], [0], [0], [1], [0, 0, 1, 1], [], []>} : vector<6x6xf32>, vector<6x64xf32>, vector<6x64xf32> -> vector<6x64xf32>
    %30 = vector.shape_cast %27 : vector<2x64xf32> to vector<2x1x64xf32>
    %31 = vector.shape_cast %29 : vector<6x64xf32> to vector<1x6x64xf32>
    %32 = vector.broadcast %30 : vector<2x1x64xf32> to vector<2x6x64xf32>
    %33 = vector.broadcast %31 : vector<1x6x64xf32> to vector<2x6x64xf32>
    %34 = arith.addf %32, %33 : vector<2x6x64xf32>
    %35 = vector.shape_cast %6 : vector<1x64xf32> to vector<1x1x64xf32>
    %36 = vector.broadcast %35 : vector<1x1x64xf32> to vector<2x6x64xf32>
    %37 = arith.addf %34, %36 : vector<2x6x64xf32>
    %cst_23 = arith.constant 0.000000e+00 : f32
    %38 = vector.broadcast %cst_23 : f32 to vector<2x6x64xf32>
    %39 = arith.maximumf %37, %38 : vector<2x6x64xf32>
    %40 = vector.shape_cast %7 : vector<1x64xf32> to vector<1x1x64xf32>
    %41 = vector.broadcast %40 : vector<1x1x64xf32> to vector<2x6x64xf32>
    %42 = arith.mulf %39, %41 : vector<2x6x64xf32>
    %cst_24 = arith.constant dense<0.000000e+00> : vector<2x6xf32>
    %43 = vector.multi_reduction <add>, %42, %cst_24 [2] : vector<2x6x64xf32> to vector<2x6xf32>
    %44 = vector.broadcast %8 : vector<1x1xf32> to vector<2x6xf32>
    %45 = arith.addf %43, %44 : vector<2x6xf32>
    %c0_25 = arith.constant 0 : index
    %c0_26 = arith.constant 0 : index
    %46 = vector.load %arg5[%c0_25, %c0_26] : memref<2x6xf32, #tpu.memory_space<vmem>>, vector<2x6xf32>
    tpu.vector_store %arg5[%c0_25, %c0_26], %45 {strides = array<i32>} : memref<2x6xf32, #tpu.memory_space<vmem>>, vector<2x6xf32>,
    return
  }
}

</mosaic_0001>

<bundles_post_ra>
// kernel: dqn_model_forward.1
= control target key start
LH: loop header
LB: loop body
LE: loop exit
PB: predicated region body
PF: predicated region fallthrough
CT: control target
= control target key end

     0   :  { %vm58_vm0 = vcmask 1045504   ;;  %v290_v2 = vmov 0   ;;  %vm51_vm1 = vcmask 113664   ;;  %s389_s0 = inlined_call_operand.vmem [shape: f32[16,1], index: 0, kind: input, shape index: {}]   ;;  %s390_s1 = inlined_call_operand.vmem [shape: f32[16,14], index: 1, kind: input, shape index: {}]   ;;  %s391_s2 = inlined_call_operand.vmem [shape: f32[2,7], index: 2, kind: input, shape index: {}]   ;;  %s392_s3 = inlined_call_operand.vmem [shape: f32[6,6], index: 3, kind: input, shape index: {}]   ;;  %s393_s4 = inlined_call_operand.vmem [shape: f32[104,64], index: 4, kind: input, shape index: {}]   ;;  %s394_s5 = inlined_call_operand.hbm [shape: f32[2,6], index: 5, kind: output, shape index: {}]  }
   0x1   :  { %v22_v0 = vld [vmem:[%s393_s4 + $0x8] sm:$0x3f]  ;;  %v21_v1 = vld [vmem:[%s393_s4] sm:$0xff]  ;;  %259 = vset.pattern.permute.xlu0 %v290_v2 }
   0x2   :  { %247 = vmatpush.msk.msra.mxu0 %vm58_vm0, %v22_v0  ;;  %v49_v3 = vld [vmem:[%s390_s1] sm:$0xff] }
   0x3   :  { %v34_v4 = vld [vmem:[%s389_s0] sm:$0xff] }
   0x4   :  { %38 = vperm.xlu0 %259, %v34_v4   ;;  %77 = vmatpush.msra.mxu0 %v21_v1 }
   0x5   :  { %10 = vsyncpa [#allocation3], 0  ;;  %248 = vmatmul.msk.f32.vlgmr.msra.gmra.mxu0 %vm51_vm1, %v49_v3  ;;  %v35_v5 = vld [vmem:[%s389_s0 + $0x8] sm:$0xff]  ;;  %v28_v7 = vld [vmem:[%s393_s4 + $0x38] sm:$0xff]  ;;  %vm165_vm2 = vcmask 48128   ;;  %vm114_vm3 = vcmask 1046528   ;;  %v223_v3 = vlaneseq }
   0x6   :  { %v50_v6 = vld [vmem:[%s390_s1 + $0x8] sm:$0xff]  ;;  %v27_v8 = vld [vmem:[%s393_s4 + $0x30] sm:$0xff]  ;;  %156 = vmatpush.msra.mxu2 %v28_v7  ;;  %v25_v10 = vld [vmem:[%s393_s4 + $0x20] sm:$0xff]  ;;  %vm110_vm4 = vcmask 56320   ;;  %vm92_vm5 = vcmask 261120   ;;  %vm140_vm6 = vcmask 1041409  }
   0x7   :  { %v26_v9 = vld [vmem:[%s393_s4 + $0x28] sm:$0xff]  ;;  %v260_v11 = vld [vmem:[%s393_s4 + $0x10] ss:$0 sm:$0xff]  ;;  %v261_v14 = vld [vmem:[%s393_s4 + $0x18] ss:$0 sm:$0xff]  ;;  %vm208_vm7 = vcmask 521216  }
   0x8   :  { %157 = vmatpush.msra.mxu2 %v27_v8  ;;  %v30_v15 = vld [vmem:[%s393_s4 + $0x48] sm:$0x3f]  ;;  %v164_v16 = vld [vmem:[%s392_s3] sm:$0x3f]  ;;  %v262_v53 = vld [vmem:[%s393_s4 + $0x50] ss:$0 sm:$0xff] }
   0x9   :  { %253 = vmatpush.msk.msra.mxu3 %vm58_vm0, %v30_v15  ;;  %v29_v18 = vld [vmem:[%s393_s4 + $0x40] sm:$0x7f]  ;;  %v263_v58 = vld [vmem:[%s393_s4 + $0x58] ss:$0 sm:$0xff]  ;;  %s291_s28 = smov [#allocation2]   ;;  %s238_s6 = sshll.u32 %s394_s5, 4  ;;  %s239_s6 = int_to_ptr.hbm [resolvable:$true] %s238_s6 }
   0xa   :  { %158 = vmatpush.msra.mxu2 %v26_v9  ;;  %v109_v19 = vld [vmem:[%s391_s2] sm:$0x3]  ;;  %254 = vmatmul.msk.f32.vlgmr.msra.gmra.mxu3 %vm165_vm2, %v164_v16  ;;  %vm229_vm8 = vcmask 41984  }
   0xb   :  { %250 = vmatpush.msk.msra.mxu1 %vm114_vm3, %v29_v18  ;;  %v33_v46 = vld [vmem:[%s393_s4 + $0x60] sm:$0x1]  ;;  %s236_s4 = sshll.u32 %s291_s28, 4  ;;  %s237_s4 = int_to_ptr.vmem [resolvable:$true] %s236_s4 }
   0xc   :  { %43 = vperm.xlu0 %259, %v35_v5   ;;  %159 = vmatpush.msra.mxu2 %v25_v10  ;;  %255 = vpush %v33_v46  ;;  %v224_v5 = vand.u32 127, %v223_v3 }
   0xd   :  { %249 = vmatmul.msk.f32.gmra.mxu0 %vm51_vm1, %v50_v6  ;;  %251 = vmatmul.msk.f32.vlgmr.msra.gmra.mxu1 %vm110_vm4, %v109_v19 }
  0x3d   :  { %s256_s27 = spop %255 }
  0x3e   :  { %v217_v4 = vstv %s256_s27 }
  0x76   :  { %v39_v12 = vpop.permute.xlu0 %38 }
  0x77   :  { %v47_v13 = vmul.f32 %v260_v11, %v39_v12 }
  0x7e   :  { %v44_v22 = vpop.permute.xlu0 %43 }
  0x7f   :  { %v48_v24 = vmul.f32 %v260_v11, %v44_v22 }
  0x82   :  { %v79_v17 = vpop.f32.mrf.mxu0 }
  0x83   :  { %v85_v20 = vadd.f32 %v79_v17, %v47_v13 }
  0x85   :  { %v88_v21 = vadd.f32 %v261_v14, %v85_v20 }
  0x87   :  { %v90_v23 = vmax.f32 %v88_v21, 0.0 }
  0x89   :  { %v93_v25 = vsel %vm92_vm5, %v90_v23, 0.0 }
  0x8a   :  { %v82_v26 = vpop.f32.mrf.mxu0  ;;  %v94_v27 = vrot.slane %v93_v25, 4  ;;  %v135_v47 = vpop.f32.mrf.mxu1 }
  0x8b   :  { %v86_v28 = vadd.f32 %v82_v26, %v48_v24 }
  0x8c   :  { %v95_v29 = vadd.f32 %v94_v27, %v93_v25 }
  0x8d   :  { %v89_v30 = vadd.f32 %v261_v14, %v86_v28  ;;  %v189_v50 = vpop.f32.mrf.mxu3 }
  0x8e   :  { %v96_v31 = vrot.slane %v95_v29, 2 }
  0x8f   :  { %v91_v32 = vmax.f32 %v89_v30, 0.0 }
  0x90   :  { %v97_v34 = vadd.f32 %v96_v31, %v95_v29 }
  0x91   :  { %v100_v33 = vsel %vm92_vm5, %v91_v32, 0.0 }
  0x92   :  { %v101_v35 = vrot.slane %v100_v33, 4  ;;  %v98_v37 = vrot.slane %v97_v34, 1 }
  0x94   :  { %v102_v36 = vadd.f32 %v101_v35, %v100_v33  ;;  %v99_v40 = vadd.f32 %v98_v37, %v97_v34 }
  0x96   :  { %v103_v38 = vrot.slane %v102_v36, 2  ;;  %v107_v43 = vmul.f32 0.125, %v99_v40 }
  0x98   :  { %v104_v39 = vadd.f32 %v103_v38, %v102_v36 }
  0x9a   :  { %v105_v41 = vrot.slane %v104_v39, 1 }
  0x9c   :  { %v106_v42 = vadd.f32 %v105_v41, %v104_v39 }
  0x9e   :  { %v108_v44 = vmul.f32 0.125, %v106_v42 }
  0xa0   :  { %v141_v45 = vsel %vm140_vm6, %v108_v44, %v107_v43 }
  0xa1   :  { %252 = vmatmul.msk.f32.vlgmr.msra.gmra.mxu2 %vm92_vm5, %v141_v45 }
 0x124   :  { %v161_v48 = vpop.f32.mrf.mxu2 }
 0x125   :  { %v162_v49 = vadd.f32 %v161_v48, %v135_v47 }
 0x127   :  { %v193_v51 = vrot.slane %v162_v49, 1  ;;  %v194_v52 = vperm.slane %v162_v49, 0 }
 0x129   :  { %v195_v54 = vperm.slane %v193_v51, 0  ;;  %v198_v55 = vadd.f32 %v194_v52, %v189_v50 }
 0x12b   :  { %v199_v56 = vadd.f32 %v195_v54, %v189_v50  ;;  %v201_v57 = vadd.f32 %v262_v53, %v198_v55 }
 0x12d   :  { %v202_v59 = vadd.f32 %v262_v53, %v199_v56  ;;  %v203_v60 = vmax.f32 %v201_v57, 0.0 }
 0x12f   :  { %v206_v61 = vmul.f32 %v263_v58, %v203_v60  ;;  %v204_v62 = vmax.f32 %v202_v59, 0.0 }
 0x131   :  { %v209_v63 = vsel %vm208_vm7, %v206_v61, 0.0  ;;  %v207_v0 = vmul.f32 %v263_v58, %v204_v62 }
 0x132   :  { %210 = vadd.xlane.f32.xlu1 %v209_v63 }
 0x133   :  { %v212_v1 = vsel %vm208_vm7, %v207_v0, 0.0 }
 0x13a   :  { %213 = vadd.xlane.f32.xlu1 %v212_v1 }
 0x1a5   :  { %v211_v2 = vpop.xlane.xlu1 %210 }
 0x1a6   :  { %v219_v6 = vadd.f32 %v217_v4, %v211_v2 }
 0x1a8   :  { %v225_v9 = vperm.slane %v219_v6, %v224_v5 }
 0x1ad   :  { %v214_v7 = vpop.xlane.xlu1 %213 }
 0x1ae   :  { %v220_v8 = vadd.f32 %v217_v4, %v214_v7 }
 0x1b0   :  { %v226_v10 = vperm.slane %v220_v8, %v224_v5 }
 0x1b2   :  { %v227_v11 = vsel %vm140_vm6, %v226_v10, %v225_v9 }
 0x1b3   :  { %230 = vst.msk [vmem:[#allocation2] sm:$0x3] %vm229_vm8, %v227_v11 }
 0x1b4   :  { %241 = dma.vmem_to_hbm [thread:$0]  %s237_s4, 32, %s239_s6, [#allocation3]  }
 0x1b5   :  { %288 = dma.done.wait [#allocation3], 32  }
 0x1b6   :  { %289 = vsyncadd [#allocation3], 4294967264 }
 0x1b7   :  { %246 = vsyncpa [#allocation3], 1 }

</bundles_post_ra>
